<compile_context>
chip_gen: v7x
topology: tpu7x:2x2x1
jax: 0.10.0
libtpu: 0.0.40
codegen_flags: <defaults>
</compile_context>

<pallas_src>
import functools

import jax
import jax.numpy as jnp
from jax import lax
from jax.experimental import pallas as pl
from jax.experimental.pallas import tpu as pltpu

GEM_P = 3.0        # GeM nn.Parameter init value, baked as a compile-time constant.
                   # TODO(synk): if a trainable runtime p is needed, pass it via SMEM
                   # and fall back to exp(p*log(x)).
GEM_EPS = 1e-6     # GeM clamp eps
L2_EPS = 1e-12     # torch.nn.functional.normalize eps


def _gem_power(x, p):
    # p is a compile-time constant; a small integer power stays on the VALU
    # (a runtime pow would be exp(p*log(x)) = 2 EUP transcendentals / element).
    if float(p).is_integer() and p >= 1:
        y = x
        for _ in range(int(p) - 1):
            y = y * x
        return y
    return x ** p


# ------------- fused backbone stand-in + L2Norm + GeM + Linear + L2Norm -------
# TODO(synk): the pretrained torchvision ResNet/VGG backbone cannot be reproduced
# without its checkpoint; it is replaced by a single deterministic patch-embed
# matmul (stride = kernel = PATCH) + ReLU.  The aggregation head
# (L2Norm -> GeM -> Flatten -> Linear -> L2Norm) is faithful.
def _fused_geoloc_kernel(xp_ref, wbb_ref, wfc_ref, bfc_ref, o_ref, acc_ref,
                         *, p, s_total):
    # xp_ref : (1, TS, K)   bf16      wbb_ref: (K, FEAT)   bf16
    # wfc_ref: (FEAT, OUT)  bf16      bfc_ref: (1, OUT)    f32
    # o_ref  : (1, 1, OUT)  f32       acc_ref: (1, FEAT)   f32 scratch
    s_idx = pl.program_id(1)

    @pl.when(s_idx == 0)
    def _():
        acc_ref[...] = jnp.zeros_like(acc_ref)

    # Backbone stand-in: patch-embed matmul (MXU, bf16 in / f32 acc) + ReLU.
    f = jnp.dot(xp_ref[0], wbb_ref[...], preferred_element_type=jnp.float32)
    f = jnp.maximum(f, 0.0)                                    # (TS, FEAT) f32

    # L2Norm over the channel dim (torch dim=1 of NCHW == lane dim here):
    # x * rsqrt(max(sum(x^2), eps^2)) == x / max(||x||, eps).
    ss = jnp.sum(f * f, axis=-1, keepdims=True)
    f = f * lax.rsqrt(jnp.maximum(ss, L2_EPS * L2_EPS))

    # GeM: accumulate sum over spatial positions of clamp(x, eps)^p.
    xc = jnp.maximum(f, GEM_EPS)
    acc_ref[...] += jnp.sum(_gem_power(xc, p), axis=0, keepdims=True)  # (1, FEAT)

    @pl.when(s_idx == pl.num_programs(1) - 1)
    def _():
        # GeM finalize: mean over the TRUE number of spatial positions, then 1/p root
        # (one (1, FEAT) vector per image -> EUP pow cost is negligible).
        pooled = (acc_ref[...] * (1.0 / s_total)) ** (1.0 / p)         # (1, FEAT) f32
        # Flatten -> Linear -> final L2Norm, fused here so `pooled` never hits HBM.
        y = jnp.dot(pooled.astype(jnp.bfloat16), wfc_ref[...],
                    preferred_element_type=jnp.float32) + bfc_ref[...]  # (1, OUT)
        ss2 = jnp.sum(y * y, axis=-1, keepdims=True)
        o_ref[0] = y * lax.rsqrt(jnp.maximum(ss2, L2_EPS * L2_EPS))


# ------------------------------- wrapper --------------------------------------
def _pick_s_tile(s, max_tile=512):
    # Largest S tile <= max_tile that divides S (so the GeM mean never sees a
    # padded partial tile) and keeps the sublane dim a multiple of 8.
    if s <= max_tile:
        return s
    for t in range(max_tile, 7, -1):
        if s % t == 0 and t % 8 == 0:
            return t
    return s


def geolocalization_net(x_nchw, params, *, patch=4):
    N, C, H, W = x_nchw.shape
    Hf, Wf = H // patch, W // patch
    S = Hf * Wf
    K = C * patch * patch

    # NCHW -> (N, S, K): one patch per row, channels-last (glue only); bf16
    # halves DMA bytes on the dominant input tensor.
    xp = x_nchw.reshape(N, C, Hf, patch, Wf, patch)
    xp = xp.transpose(0, 2, 4, 1, 3, 5).reshape(N, S, K).astype(jnp.bfloat16)

    w_bb = params["backbone_w"].astype(jnp.bfloat16)       # (K, FEAT)
    w_fc = params["fc_w"].astype(jnp.bfloat16)              # (FEAT, OUT) = torch weight^T
    b_fc = params["fc_b"].astype(jnp.float32)                # (1, OUT)
    feat_dim = w_bb.shape[1]
    out_dim = w_fc.shape[1]
    ts = _pick_s_tile(S)

    out = pl.pallas_call(
        functools.partial(_fused_geoloc_kernel, p=GEM_P, s_total=S),
        grid_spec=pltpu.PrefetchScalarGridSpec(
            num_scalar_prefetch=0,
            grid=(N, S // ts),
            in_specs=[
                pl.BlockSpec((1, ts, K), lambda n, s: (n, s, 0)),
                pl.BlockSpec((K, feat_dim), lambda n, s: (0, 0)),
                pl.BlockSpec((feat_dim, out_dim), lambda n, s: (0, 0)),
                pl.BlockSpec((1, out_dim), lambda n, s: (0, 0)),
            ],
            out_specs=pl.BlockSpec((1, 1, out_dim), lambda n, s: (n, 0, 0)),
            scratch_shapes=[pltpu.VMEM((1, feat_dim), jnp.float32)],
        ),
        out_shape=jax.ShapeDtypeStruct((N, 1, out_dim), jnp.float32),
        compiler_params=pltpu.CompilerParams(
            dimension_semantics=("parallel", "arbitrary")),
    )(xp, w_bb, w_fc, b_fc)

    return out.reshape(N, out_dim)                           # tiny, glue only


if __name__ == "__main__":
    # Small, deterministic config: resnet18-style features_dim=512, fc_output_dim=128.
    N, C_IN, H, W = 2, 4, 16, 16
    PATCH = 4
    FEAT_DIM = 512
    FC_OUT = 128

    key = jax.random.PRNGKey(0)
    k1, k2, k3, k4 = jax.random.split(key, 4)
    K = C_IN * PATCH * PATCH

    params = {
        "backbone_w": jax.random.normal(k1, (K, FEAT_DIM), jnp.float32) / jnp.sqrt(K),
        "fc_w": jax.random.normal(k2, (FEAT_DIM, FC_OUT), jnp.float32) / jnp.sqrt(FEAT_DIM),
        "fc_b": 0.01 * jax.random.normal(k3, (1, FC_OUT), jnp.float32),
    }

    x = jax.random.normal(k4, (N, C_IN, H, W), jnp.float32)

    fwd = jax.jit(functools.partial(geolocalization_net, patch=PATCH))
    out = jax.block_until_ready(fwd(x, params))

    assert out.shape == (N, FC_OUT), out.shape
    assert bool(jnp.all(jnp.isfinite(out)))
    # final L2Norm => unit-norm rows
    assert bool(jnp.allclose(jnp.linalg.norm(out, axis=-1), 1.0, atol=1e-4))
    print("KERNEL_OK")
</pallas_src>

<mosaic_0001>
module attributes {stable_mosaic.version = 11 : i64} {
  func.func @_fused_geoloc_kernel(%arg0: i32, %arg1: i32, %arg2: memref<1x16x64xbf16, #tpu.memory_space<vmem>>, %arg3: memref<64x512xbf16, #tpu.memory_space<vmem>>, %arg4: memref<512x128xbf16, #tpu.memory_space<vmem>>, %arg5: memref<1x128xf32, #tpu.memory_space<vmem>>, %arg6: memref<1x1x128xf32, #tpu.memory_space<vmem>>, %arg7: memref<1x512xf32, #tpu.memory_space<vmem>>) attributes {dimension_semantics = [#tpu.dimension_semantics<parallel>, #tpu.dimension_semantics<arbitrary>], iteration_bounds = array<i64: 2, 1>, scalar_prefetch = 0 : i64, scratch_operands = 1 : i64, tpu.core_type = #tpu.core_type<tc>, window_params = [{transform_indices = @transform_0, window_bounds = array<i64: 1, 16, 64>}, {pipeline_mode = #tpu.pipeline_mode<synchronous>, transform_indices = @transform_1, window_bounds = array<i64: 64, 512>}, {pipeline_mode = #tpu.pipeline_mode<synchronous>, transform_indices = @transform_2, window_bounds = array<i64: 512, 128>}, {pipeline_mode = #tpu.pipeline_mode<synchronous>, transform_indices = @transform_3, window_bounds = array<i64: 1, 128>}, {transform_indices = @transform_4, window_bounds = array<i64: 1, 1, 128>}]} {
    %c0_i32 = arith.constant 0 : i32
    %0 = arith.cmpi eq, %arg1, %c0_i32 : i32
    %1 = arith.extui %0 : i1 to i32
    %c0_i32_0 = arith.constant 0 : i32
    %2 = arith.cmpi ne, %1, %c0_i32_0 : i32
    scf.if %2 {
      %cst_16 = arith.constant 0.000000e+00 : f32
      %29 = vector.broadcast %cst_16 : f32 to vector<1x512xf32>
      %c0_17 = arith.constant 0 : index
      %c0_18 = arith.constant 0 : index
      %30 = vector.load %arg7[%c0_17, %c0_18] : memref<1x512xf32, #tpu.memory_space<vmem>>, vector<1x512xf32>
      tpu.vector_store %arg7[%c0_17, %c0_18], %29 {strides = array<i32>} : memref<1x512xf32, #tpu.memory_space<vmem>>, vector<1x512xf32>,
    } else {
    }
    %c0 = arith.constant 0 : index
    %c0_1 = arith.constant 0 : index
    %c0_2 = arith.constant 0 : index
    %3 = vector.load %arg2[%c0, %c0_1, %c0_2] : memref<1x16x64xbf16, #tpu.memory_space<vmem>>, vector<1x16x64xbf16>
    %4 = vector.shape_cast %3 : vector<1x16x64xbf16> to vector<16x64xbf16>
    %c0_3 = arith.constant 0 : index
    %c0_4 = arith.constant 0 : index
    %5 = vector.load %arg3[%c0_3, %c0_4] : memref<64x512xbf16, #tpu.memory_space<vmem>>, vector<64x512xbf16>
    %cst = arith.constant dense<0.000000e+00> : vector<16x512xf32>
    %6 = tpu.matmul %4, %5, %cst {dimension_numbers = #tpu.dot_dimension_numbers<[1], [0], [0], [1], [0, 0, 1, 1], [], []>} : vector<16x64xbf16>, vector<64x512xbf16>, vector<16x512xf32> -> vector<16x512xf32>
    %cst_5 = arith.constant 0.000000e+00 : f32
    %7 = vector.broadcast %cst_5 : f32 to vector<16x512xf32>
    %8 = arith.maximumf %6, %7 : vector<16x512xf32>
    %9 = arith.mulf %8, %8 : vector<16x512xf32>
    %cst_6 = arith.constant dense<0.000000e+00> : vector<16xf32>
    %10 = vector.multi_reduction <add>, %9, %cst_6 [1] : vector<16x512xf32> to vector<16xf32>
    %11 = vector.shape_cast %10 : vector<16xf32> to vector<16x1xf32>
    %cst_7 = arith.constant 1.000000e-24 : f32
    %12 = vector.broadcast %cst_7 : f32 to vector<16x1xf32>
    %13 = arith.maximumf %11, %12 : vector<16x1xf32>
    %14 = math.rsqrt %13 : vector<16x1xf32>
    %15 = vector.broadcast %14 : vector<16x1xf32> to vector<16x512xf32>
    %16 = arith.mulf %8, %15 : vector<16x512xf32>
    %cst_8 = arith.constant 9.99999997E-7 : f32
    %17 = vector.broadcast %cst_8 : f32 to vector<16x512xf32>
    %18 = arith.maximumf %16, %17 : vector<16x512xf32>
    %c0_9 = arith.constant 0 : index
    %c0_10 = arith.constant 0 : index
    %19 = vector.load %arg7[%c0_9, %c0_10] : memref<1x512xf32, #tpu.memory_space<vmem>>, vector<1x512xf32>
    %20 = arith.mulf %18, %18 : vector<16x512xf32>
    %21 = arith.mulf %20, %18 : vector<16x512xf32>
    %cst_11 = arith.constant dense<0.000000e+00> : vector<512xf32>
    %22 = vector.multi_reduction <add>, %21, %cst_11 [0] : vector<16x512xf32> to vector<512xf32>
    %23 = vector.shape_cast %22 : vector<512xf32> to vector<1x512xf32>
    %24 = arith.addf %19, %23 : vector<1x512xf32>
    %c0_12 = arith.constant 0 : index
    %c0_13 = arith.constant 0 : index
    %25 = vector.load %arg7[%c0_12, %c0_13] : memref<1x512xf32, #tpu.memory_space<vmem>>, vector<1x512xf32>
    tpu.vector_store %arg7[%c0_12, %c0_13], %24 {strides = array<i32>} : memref<1x512xf32, #tpu.memory_space<vmem>>, vector<1x512xf32>,
    %c0_i32_14 = arith.constant 0 : i32
    %26 = arith.cmpi eq, %arg1, %c0_i32_14 : i32
    %27 = arith.extui %26 : i1 to i32
    %c0_i32_15 = arith.constant 0 : i32
    %28 = arith.cmpi ne, %27, %c0_i32_15 : i32
    scf.if %28 {
      %c0_16 = arith.constant 0 : index
      %c0_17 = arith.constant 0 : index
      %29 = vector.load %arg7[%c0_16, %c0_17] : memref<1x512xf32, #tpu.memory_space<vmem>>, vector<1x512xf32>
      %cst_18 = arith.constant 6.250000e-02 : f32
      %30 = vector.broadcast %cst_18 : f32 to vector<1x512xf32>
      %31 = arith.mulf %29, %30 : vector<1x512xf32>
      %cst_19 = arith.constant 0.333333343 : f32
      %32 = vector.broadcast %cst_19 : f32 to vector<1x512xf32>
      %33 = math.powf %31, %32 : vector<1x512xf32>
      %34 = arith.truncf %33 : vector<1x512xf32> to vector<1x512xbf16>
      %c0_20 = arith.constant 0 : index
      %c0_21 = arith.constant 0 : index
      %35 = vector.load %arg4[%c0_20, %c0_21] : memref<512x128xbf16, #tpu.memory_space<vmem>>, vector<512x128xbf16>
      %cst_22 = arith.constant dense<0.000000e+00> : vector<1x128xf32>
      %36 = tpu.matmul %34, %35, %cst_22 {dimension_numbers = #tpu.dot_dimension_numbers<[1], [0], [0], [1], [0, 0, 1, 1], [], []>} : vector<1x512xbf16>, vector<512x128xbf16>, vector<1x128xf32> -> vector<1x128xf32>
      %c0_23 = arith.constant 0 : index
      %c0_24 = arith.constant 0 : index
      %37 = vector.load %arg5[%c0_23, %c0_24] : memref<1x128xf32, #tpu.memory_space<vmem>>, vector<1x128xf32>
      %38 = arith.addf %36, %37 : vector<1x128xf32>
      %39 = arith.mulf %38, %38 : vector<1x128xf32>
      %cst_25 = arith.constant dense<0.000000e+00> : vector<1xf32>
      %40 = vector.multi_reduction <add>, %39, %cst_25 [1] : vector<1x128xf32> to vector<1xf32>
      %41 = vector.shape_cast %40 : vector<1xf32> to vector<1x1xf32>
      %cst_26 = arith.constant 1.000000e-24 : f32
      %42 = vector.broadcast %cst_26 : f32 to vector<1x1xf32>
      %43 = arith.maximumf %41, %42 : vector<1x1xf32>
      %44 = math.rsqrt %43 : vector<1x1xf32>
      %45 = vector.broadcast %44 : vector<1x1xf32> to vector<1x128xf32>
      %46 = arith.mulf %38, %45 : vector<1x128xf32>
      %c0_27 = arith.constant 0 : index
      %c0_28 = arith.constant 0 : index
      %c0_29 = arith.constant 0 : index
      %47 = vector.load %arg6[%c0_27, %c0_28, %c0_29] : memref<1x1x128xf32, #tpu.memory_space<vmem>>, vector<1x1x128xf32>
      %48 = vector.shape_cast %47 : vector<1x1x128xf32> to vector<1x128xf32>
      %49 = vector.shape_cast %46 : vector<1x128xf32> to vector<1x1x128xf32>
      tpu.vector_store %arg6[%c0_27, %c0_28, %c0_29], %49 {strides = array<i32>} : memref<1x1x128xf32, #tpu.memory_space<vmem>>, vector<1x1x128xf32>,
    } else {
    }
    return
  }
  func.func @transform_0(%arg0: i32, %arg1: i32) -> (i32, i32, i32) {
    %c0_i32 = arith.constant 0 : i32
    %c0_i32_0 = arith.constant 0 : i32
    return %arg0, %arg1, %c0_i32 : i32, i32, i32
  }
  func.func @transform_1(%arg0: i32, %arg1: i32) -> (i32, i32) {
    %c0_i32 = arith.constant 0 : i32
    %c0_i32_0 = arith.constant 0 : i32
    %c0_i32_1 = arith.constant 0 : i32
    return %c0_i32, %c0_i32_0 : i32, i32
  }
  func.func @transform_2(%arg0: i32, %arg1: i32) -> (i32, i32) {
    %c0_i32 = arith.constant 0 : i32
    %c0_i32_0 = arith.constant 0 : i32
    %c0_i32_1 = arith.constant 0 : i32
    return %c0_i32, %c0_i32_0 : i32, i32
  }
  func.func @transform_3(%arg0: i32, %arg1: i32) -> (i32, i32) {
    %c0_i32 = arith.constant 0 : i32
    %c0_i32_0 = arith.constant 0 : i32
    %c0_i32_1 = arith.constant 0 : i32
    return %c0_i32, %c0_i32_0 : i32, i32
  }
  func.func @transform_4(%arg0: i32, %arg1: i32) -> (i32, i32, i32) {
    %c0_i32 = arith.constant 0 : i32
    %c0_i32_0 = arith.constant 0 : i32
    %c0_i32_1 = arith.constant 0 : i32
    return %arg0, %c0_i32, %c0_i32_0 : i32, i32, i32
  }
}

</mosaic_0001>

<bundles_post_ra>
// kernel: geolocalization_net.1
= control target key start
LH: loop header
LB: loop body
LE: loop exit
PB: predicated region body
PF: predicated region fallthrough
CT: control target
= control target key end

     0   :  { %9 = vsyncpa [#allocation4], 0  ;;  %s1678_s0 = inlined_call_operand.vmem [shape: bf16[2,16,64], index: 0, kind: input, shape index: {}]   ;;  %s1679_s1 = inlined_call_operand.vmem [shape: bf16[64,512], index: 1, kind: input, shape index: {}]   ;;  %s1680_s2 = inlined_call_operand.vmem [shape: bf16[512,128], index: 2, kind: input, shape index: {}]   ;;  %s1681_s3 = inlined_call_operand.vmem [shape: f32[1,128], index: 3, kind: input, shape index: {}]   ;;  %s1682_s4 = inlined_call_operand.hbm [shape: f32[2,1,128], index: 4, kind: output, shape index: {}]  }
   0x1   :  { %11 = vsyncpa [#allocation4 + $0x1], 0  ;;  %s1369_s15 = smov 0   ;;  %s1371_s16 = smov 0  }
   0x2   :  { %s1373_s17 = smov 0   ;;  %s1375_s18 = smov 0  }
   0x3   :  { %s1377_s19 = smov 0   ;;  %s1379_s20 = smov 0  }
   0x4 LB: > { %s1011_s21 = sadd.s32 4294967295, %s1338_s20   ;;  %s1012_s22 = sadd.s32 4294967294, %s1338_s20   ;;  %s1338_s20 = sphi %s1379_s20, %s17_s20   ;;  %s1334_s19 = sphi %s1377_s19, %s1691_s19   ;;  %s1330_s18 = sphi %s1375_s18, %s1690_s18   ;;  %s1326_s17 = sphi %s1373_s17, %s1689_s17   ;;  %s1322_s16 = sphi %s1371_s16, %s1688_s16   ;;  %s1318_s15 = sphi %s1369_s15, %s1687_s15  }
   0x5   : > { %s29_s23 = sadd.s32 1, %s1334_s19  ;;  %s127_s24 = sadd.s32 1, %s1326_s17 }
   0x6   : > { %p31_p0 = scmp.ge.s32.totalorder %s29_s23, 2  ;;  %p137_p1 = scmp.ne.s32.totalorder %s1326_s17, %s1322_s16 }
   0x7   : > { %p138_p2 = scmp.eq.s32.totalorder %s1011_s21, 1  ;;  %p143_p3 = scmp.ne.s32.totalorder %s1322_s16, %s1318_s15 }
   0x8   : > { %s1693_s23 = smov (%p31_p0, %s29_s23), 0  ;;  %p144_p5 = scmp.eq.s32.totalorder %s1012_s22, 1 }
   0x9   : > { %p1409_p4 = por %p138_p2, %p137_p1  ;;  %s124_s26 = ssub.s32 %s1334_s19, %s1693_s23 }
   0xa   : > { %p1015_p6 = scmp.ge.s32.totalorder %s1338_s20, 1  ;;  %p125_p7 = scmp.eq.s32.totalorder %s124_s26, 0 }
   0xb   : > { %p1416_p8 = por %p144_p5, %p143_p3  ;;  %p184_p9 = scmp.lt.s32.totalorder %s1338_s20, 3 }
   0xc   : > { %s1422_s28 = scalar_select %p125_p7, %s1326_s17, %s127_s24  }
   0xd   : > { %p185_p10 = pnand %p1015_p6, %p184_p9 }
   0xe   : > { %v1193_v0 = vld [vmem:[%s1679_s1 + $0x4] ss:$16 sps:$4 sm:$0xff] (!%p185_p10)   ;;  %p214_p11 = scmp.lt.s32.totalorder (!%p185_p10), %s1330_s18, 1  ;;  %v1195_v1 = vld [vmem:[%s1679_s1 + $0xc] ss:$16 sps:$4 sm:$0xff] (!%p185_p10)   ;;  %v1340_v2 = vmov (!%p185_p10), 0   ;;  %v228_v51 = vlaneseq (!%p185_p10) }
   0xf   : > { %188 = sbr.rel (%p185_p10) target bundleno = 888 (0x378), region = 36  ;;  %372 = vmatprep.mubr.bf16.mxu0 (!%p185_p10), %v1340_v2  ;;  %415 = vmatprep.mubr.bf16.mxu1 (!%p185_p10), %v1340_v2  ;;  %v1197_v3 = vld [vmem:[%s1679_s1] ss:$16 sps:$4 sm:$0xff] (!%p185_p10)   ;;  %v1198_v4 = vld [vmem:[%s1679_s1 + $0x8] ss:$16 sps:$4 sm:$0xff] (!%p185_p10)   ;;  %vm336_vm0 = vcmask (!%p185_p10), 523264  }
  0x10   : > { %340 = vmatprep.subr.bf16.mxu0 (!%p185_p10), %v1193_v0  ;;  %383 = vmatprep.subr.bf16.mxu1 (!%p185_p10), %v1195_v1  ;;  %v1199_v5 = vld [vmem:[%s1679_s1 + $0x24] ss:$16 sps:$4 sm:$0xff] (!%p185_p10)   ;;  %v1201_v6 = vld [vmem:[%s1679_s1 + $0x2c] ss:$16 sps:$4 sm:$0xff] (!%p185_p10)   ;;  %v1203_v7 = vld [vmem:[%s1679_s1 + $0x20] ss:$16 sps:$4 sm:$0xff] (!%p185_p10)  }
  0x11   : > { %341 = vmatpush1.bf16.msra.mxu0 (!%p185_p10), %v1197_v3  ;;  %384 = vmatpush1.bf16.msra.mxu1 (!%p185_p10), %v1198_v4  ;;  %v1204_v8 = vld [vmem:[%s1679_s1 + $0x28] ss:$16 sps:$4 sm:$0xff] (!%p185_p10)   ;;  %v1205_v9 = vld [vmem:[%s1679_s1 + $0x44] ss:$16 sps:$4 sm:$0xff] (!%p185_p10)   ;;  %v1207_v10 = vld [vmem:[%s1679_s1 + $0x4c] ss:$16 sps:$4 sm:$0xff] (!%p185_p10)  }
  0x12   : > { %342 = vmatprep.subr.bf16.mxu0 (!%p185_p10), %v1199_v5  ;;  %385 = vmatprep.subr.bf16.mxu1 (!%p185_p10), %v1201_v6  ;;  %v1209_v11 = vld [vmem:[%s1679_s1 + $0x40] ss:$16 sps:$4 sm:$0xff] (!%p185_p10)   ;;  %v1210_v12 = vld [vmem:[%s1679_s1 + $0x48] ss:$16 sps:$4 sm:$0xff] (!%p185_p10)   ;;  %v1211_v13 = vld [vmem:[%s1679_s1 + $0x64] ss:$16 sps:$4 sm:$0xff] (!%p185_p10)  }
  0x13   : > { %v1213_v14 = vld [vmem:[%s1679_s1 + $0x6c] ss:$16 sps:$4 sm:$0xff] (!%p185_p10)   ;;  %v1215_v15 = vld [vmem:[%s1679_s1 + $0x60] ss:$16 sps:$4 sm:$0xff] (!%p185_p10)   ;;  %v1216_v16 = vld [vmem:[%s1679_s1 + $0x68] ss:$16 sps:$4 sm:$0xff] (!%p185_p10)  }
  0x14   : > { %v1218_v48 = vld [vmem:[%s1680_s2 + $0x40] sm:$0xff] (!%p185_p10)   ;;  %v1222_v53 = vld [vmem:[%s1680_s2 + $0x48] sm:$0xff] (!%p185_p10)   ;;  %vm1528_vm1 = vcmp.lt.s32.totalorder (!%p185_p10), %v228_v51, 512  ;;  %v1341_v58 = vmov (!%p185_p10), 0.0   ;;  %v1226_v59 = vld [vmem:[%s1680_s2 + $0x50] sm:$0xff] (!%p185_p10)   ;;  %vm921_vm7 = vcmask (!%p185_p10), 1040384  }
  0x15   : > { %343 = vmatpush1.bf16.msra.mxu0 (!%p185_p10), %v1203_v7  ;;  %386 = vmatpush1.bf16.msra.mxu1 (!%p185_p10), %v1204_v8  ;;  %v1219_v49 = vld [vmem:[%s1680_s2 + $0xc0] sm:$0xff] (!%p185_p10)   ;;  %v1223_v54 = vld [vmem:[%s1680_s2 + $0xc8] sm:$0xff] (!%p185_p10)   ;;  %232 = vst.msk [vmem:[#allocation2] sm:$0xf] (!%p185_p10), %vm1528_vm1, %v1341_v58  ;;  %v1227_v60 = vld [vmem:[%s1680_s2 + $0xd0] sm:$0xff] (!%p185_p10)   ;;  %s211_s10 = sand.u32 (!%p185_p10), 1, %s1322_s16  }
  0x16   : > { %s215_s11 = scalar_select %p214_p11, %s1330_s18, 1  ;;  %344 = vmatprep.subr.bf16.mxu0 %v1205_v9  ;;  %387 = vmatprep.subr.bf16.mxu1 %v1207_v10  ;;  %v1220_v50 = vld [vmem:[%s1680_s2] sm:$0xff]   ;;  %v1224_v56 = vld [vmem:[%s1680_s2 + $0x8] sm:$0xff]   ;;  %v1228_v61 = vld [vmem:[%s1680_s2 + $0x10] sm:$0xff]  }
  0x17   : > { %v1221_v52 = vld [vmem:[%s1680_s2 + $0x80] sm:$0xff]   ;;  %v1225_v57 = vld [vmem:[%s1680_s2 + $0x88] sm:$0xff]   ;;  %v1229_v62 = vld [vmem:[%s1680_s2 + $0x90] sm:$0xff]   ;;  %s1069_s12 = sshll.u32 %s1330_s18, 4  ;;  %s212_s13 = scalar_lea.vmem [#allocation3], %s211_s10 }
  0x18   : > { %s1072_s6 = sshll.u32 %s215_s11, 3  ;;  %v1230_v63 = vld [vmem:[%s1680_s2 + $0x58] sm:$0xff]   ;;  %v1234_v3 = vld [vmem:[%s1680_s2 + $0x60] sm:$0xff]   ;;  %v1238_v7 = vld [vmem:[%s1680_s2 + $0x68] sm:$0xff]   ;;  %s942_s14 = sshll.u32 %s212_s13, 4  ;;  %s1633_s14 = int_to_ptr.vmem [resolvable:$true] %s942_s14 }
  0x19   : > { %s221_s29 = scalar_lea.vmem %s1678_s0, %s1072_s6  ;;  %345 = vmatpush1.bf16.msra.mxu0 %v1209_v11  ;;  %388 = vmatpush1.bf16.msra.mxu1 %v1210_v12  ;;  %v1231_v0 = vld [vmem:[%s1680_s2 + $0xd8] sm:$0xff]   ;;  %v1235_v4 = vld [vmem:[%s1680_s2 + $0xe0] sm:$0xff]   ;;  %v1239_v8 = vld [vmem:[%s1680_s2 + $0xe8] sm:$0xff]   ;;  %s1631_s22 = scalar_lea.hbm %s1682_s4, %s1069_s12 }
  0x1a   : > { %346 = vmatprep.subr.bf16.mxu0 %v1211_v13  ;;  %389 = vmatprep.subr.bf16.mxu1 %v1213_v14  ;;  %v1217_v17 = vld [vmem:[%s221_s29] sm:$0xff]   ;;  %v1232_v1 = vld [vmem:[%s1680_s2 + $0x18] sm:$0xff]   ;;  %v1240_v9 = vld [vmem:[%s1680_s2 + $0x28] sm:$0xff]   ;;  %s930_s24 = scalar_lea.sflag [#allocation4], %s211_s10  ;;  %s1260_s26 = scalar_lea.vmem %s1633_s14, 16 }
  0x1b   : > { %v1233_v2 = vld [vmem:[%s1680_s2 + $0x98] sm:$0xff]   ;;  %v1236_v5 = vld [vmem:[%s1680_s2 + $0x20] sm:$0xff]   ;;  %v1241_v10 = vld [vmem:[%s1680_s2 + $0xa8] sm:$0xff]   ;;  %p1261_p12 = scmp.ne.s32.totalorder %s1633_s14, %s1260_s26  ;;  %s1343_s18 = smov [#allocation3]  }
  0x1c   : > { %v1237_v6 = vld [vmem:[%s1680_s2 + $0xa0] sm:$0xff]   ;;  %v1242_v11 = vld [vmem:[%s1680_s2 + $0x70] sm:$0xff]   ;;  %s1264_s29 = sshll.u32 %s1343_s18, 4  ;;  %s1265_s29 = int_to_ptr.vmem [resolvable:$false] %s1264_s29 }
  0x1d   : > { %347 = vmatpush1.bf16.msra.mxu0 %v1215_v15  ;;  %390 = vmatpush1.bf16.msra.mxu1 %v1216_v16  ;;  %v1243_v12 = vld [vmem:[%s1680_s2 + $0xf0] sm:$0xff]   ;;  %v1246_v15 = vld [vmem:[%s1680_s2 + $0x78] sm:$0xff]   ;;  %p1262_p13 = pnand %p1261_p12, %p1409_p4  ;;  %s1266_s30 = scalar_lea.vmem %s1265_s29, 32 }
  0x1e   : > { %1073 = vmatprep.subr.bf16.mxu0 %v1218_v48  ;;  %1095 = vmatprep.subr.bf16.mxu1 %v1219_v49  ;;  %v1244_v13 = vld [vmem:[%s1680_s2 + $0x30] sm:$0xff]   ;;  %v1247_v16 = vld [vmem:[%s1680_s2 + $0xf8] sm:$0xff]   ;;  %p1267_p1 = scmp.lt.s32.totalorder %s1633_s14, %s1265_s29  ;;  %p1268_p2 = scmp.lt.s32.totalorder %s1266_s30, %s1260_s26 }
  0x1f   : > { %v1245_v14 = vld [vmem:[%s1680_s2 + $0xb0] sm:$0xff]   ;;  %p1263_p0 = pneg %p1262_p13 }
  0x20   : > { %1035 = vmatmul.mubr.msk.bf16.vlgmr.msra.gmra.mrb[0].mxu0 %vm336_vm0, %v1217_v17  ;;  %1036 = vmatmul.mubr.msk.bf16.vlgmr.msra.gmra.mrb[0].mxu1 %vm336_vm0, %v1217_v17  ;;  %v1248_v17 = vld [vmem:[%s1680_s2 + $0x38] sm:$0xff]   ;;  %p1269_p3 = por %p1268_p2, %p1267_p1 }
  0x21   : > { %1074 = vmatpush3.bf16.msra.mxu0 %v1220_v50  ;;  %1096 = vmatpush3.bf16.msra.mxu1 %v1221_v52 }
  0x22   : > { %1075 = vmatprep.subr.bf16.mxu0 %v1222_v53  ;;  %1097 = vmatprep.subr.bf16.mxu1 %v1223_v54  ;;  %p1270_p5 = pnand %p1269_p3, %p1263_p0 }
  0x25   : > { %1076 = vmatpush3.bf16.msra.mxu0 %v1224_v56  ;;  %1098 = vmatpush3.bf16.msra.mxu1 %v1225_v57 }
  0x26   : > { %1077 = vmatprep.subr.bf16.mxu0 %v1226_v59  ;;  %1099 = vmatprep.subr.bf16.mxu1 %v1227_v60 }
  0x29   : > { %1078 = vmatpush3.bf16.msra.mxu0 %v1228_v61  ;;  %1100 = vmatpush3.bf16.msra.mxu1 %v1229_v62 }
  0x2a   : > { %1079 = vmatprep.subr.bf16.mxu0 %v1230_v63  ;;  %1101 = vmatprep.subr.bf16.mxu1 %v1231_v0 }
  0x2d   : > { %1080 = vmatpush3.bf16.msra.mxu0 %v1232_v1  ;;  %1102 = vmatpush3.bf16.msra.mxu1 %v1233_v2 }
  0x2e   : > { %1081 = vmatprep.subr.bf16.mxu0 %v1234_v3  ;;  %1103 = vmatprep.subr.bf16.mxu1 %v1235_v4  ;;  %v1342_v4 = vmov 1966171168  }
  0x31   : > { %1082 = vmatpush3.bf16.msra.mxu0 %v1236_v5  ;;  %1104 = vmatpush3.bf16.msra.mxu1 %v1237_v6  ;;  %v524_v5 = vunpack.c.l.s4 %v1342_v4 }
  0x32   : > { %1083 = vmatprep.subr.bf16.mxu0 %v1238_v7  ;;  %1105 = vmatprep.subr.bf16.mxu1 %v1239_v8 }
  0x35   : > { %1084 = vmatpush3.bf16.msra.mxu0 %v1240_v9  ;;  %1106 = vmatpush3.bf16.msra.mxu1 %v1241_v10 }
  0x36   : > { %1085 = vmatprep.subr.bf16.mxu0 %v1242_v11  ;;  %1107 = vmatprep.subr.bf16.mxu1 %v1243_v12 }
  0x39   : > { %1086 = vmatpush3.bf16.msra.mxu0 %v1244_v13  ;;  %1108 = vmatpush3.bf16.msra.mxu1 %v1245_v14  ;;  %v525_v14 = vunpack.c.0.s8 %v524_v5 }
  0x3a   : > { %1087 = vmatprep.subr.bf16.mxu0 %v1246_v15  ;;  %1109 = vmatprep.subr.bf16.mxu1 %v1247_v16 }
  0x3d   : > { %1088 = vmatpush3.bf16.msra.mxu0 %v1248_v17 }
  0xf3   : > { %v374_v18 = vpop.f32.mrb[0].mxu0  ;;  %v417_v19 = vpop.f32.mrb[0].mxu1 }
  0xf4   : > { %v1477_v20 = vmax.f32 %v374_v18, 0.0  ;;  %v1479_v21 = vmax.f32 %v417_v19, 0.0  ;;  %v376_v22 = vpop.f32.mrb[1].mxu0  ;;  %v419_v23 = vpop.f32.mrb[1].mxu1  ;;  %v1249_v18 = vld [vmem:[%s1680_s2 + $0xb8] sm:$0xff]  }
  0xf5   : > { %v1481_v24 = vmax.f32 %v376_v22, 0.0  ;;  %v378_v25 = vpop.f32.mrb[2].mxu0  ;;  %v421_v26 = vpop.f32.mrb[2].mxu1  ;;  %v1485_v28 = vmax.f32 %v419_v23, 0.0  ;;  %1110 = vmatpush3.bf16.msra.mxu1 %v1249_v18  ;;  %v527_v18 = vshrl.u32 %v228_v51, 7 }
  0xf6   : > { %v434_v27 = vmul.f32 %v1477_v20, %v1477_v20  ;;  %v1487_v29 = vmax.f32 %v378_v25, 0.0  ;;  %v380_v30 = vpop.f32.mrb[3].mxu0  ;;  %v423_v31 = vpop.f32.mrb[3].mxu1  ;;  %v436_v32 = vmul.f32 %v1479_v21, %v1479_v21  ;;  %v1493_v34 = vmax.f32 %v421_v26, 0.0 }
  0xf7   : > { %v435_v33 = vmul.f32 %v1481_v24, %v1481_v24  ;;  %v1495_v35 = vmax.f32 %v380_v30, 0.0  ;;  %v1501_v39 = vmax.f32 %v423_v31, 0.0  ;;  %v437_v42 = vmul.f32 %v1485_v28, %v1485_v28 }
  0xf8   : > { %v438_v36 = vmul.f32 %v1487_v29, %v1487_v29  ;;  %v440_v40 = vmul.f32 %v1493_v34, %v1493_v34  ;;  %v569_v55 = vsub.s32 2, %v527_v18 }
  0xf9   : > { %v439_v37 = vmul.f32 %v1495_v35, %v1495_v35  ;;  %v442_v38 = vadd.f32 %v435_v33, %v434_v27  ;;  %v441_v46 = vmul.f32 %v1501_v39, %v1501_v39 }
  0xfb   : > { %v447_v41 = vadd.f32 %v439_v37, %v438_v36  ;;  %v443_v43 = vadd.f32 %v442_v38, %v436_v32 }
  0xfd   : > { %v444_v44 = vadd.f32 %v443_v43, %v437_v42  ;;  %v448_v45 = vadd.f32 %v447_v41, %v440_v40 }
  0xff   : > { %445 = vadd.xlane.f32.xlu0 %v444_v44  ;;  %v449_v47 = vadd.f32 %v448_v45, %v441_v46 }
 0x103   : > { %450 = vadd.xlane.f32.xlu0 %v449_v47 }
 0x18c   : > { %v446_v19 = vpop.xlane.xlu0 %445 }
 0x18d   : > { %v452_v22 = vmax.f32 %v446_v19, 1e-24 }
 0x18f   : > { %1250 = vrsqrt.f32 %v452_v22 }
 0x190   : > { %v451_v23 = vpop.xlane.xlu0 %450 }
 0x191   : > { %v453_v25 = vmax.f32 %v451_v23, 1e-24 }
 0x193   : > { %1252 = vrsqrt.f32 %v453_v25 }
 0x199   : > { %v1251_v26 = vpop.eup %1250 }
 0x19a   : > { %v456_v27 = vmul.f32 %v1251_v26, %v1477_v20  ;;  %v457_v30 = vmul.f32 %v1251_v26, %v1481_v24  ;;  %v458_v31 = vmul.f32 %v1251_v26, %v1479_v21  ;;  %v459_v32 = vmul.f32 %v1251_v26, %v1485_v28 }
 0x19c   : > { %v464_v33 = vmax.f32 %v456_v27, 1e-06  ;;  %v465_v36 = vmax.f32 %v457_v30, 1e-06  ;;  %v466_v37 = vmax.f32 %v458_v31, 1e-06 }
 0x19d   : > { %v1253_v38 = vpop.eup %1252  ;;  %v467_v40 = vmax.f32 %v459_v32, 1e-06  ;;  %v528_v32 = vsub.s32 %v525_v14, %v527_v18 }
 0x19e   : > { %v460_v41 = vmul.f32 %v1253_v38, %v1487_v29  ;;  %v461_v42 = vmul.f32 %v1253_v38, %v1495_v35  ;;  %v462_v43 = vmul.f32 %v1253_v38, %v1493_v34  ;;  %v463_v44 = vmul.f32 %v1253_v38, %v1501_v39 }
 0x19f   : > { %v473_v20 = vmul.f32 %v464_v33, %v464_v33  ;;  %v474_v45 = vmul.f32 %v465_v36, %v465_v36  ;;  %v475_v24 = vmul.f32 %v466_v37, %v466_v37  ;;  %v476_v21 = vmul.f32 %v467_v40, %v467_v40 }
 0x1a0   : > { %v468_v46 = vmax.f32 %v460_v41, 1e-06  ;;  %v469_v47 = vmax.f32 %v461_v42, 1e-06  ;;  %v470_v28 = vmax.f32 %v462_v43, 1e-06 }
 0x1a1   : > { %v471_v48 = vmax.f32 %v463_v44, 1e-06  ;;  %v481_v54 = vmul.f32 %v473_v20, %v464_v33  ;;  %v482_v29 = vmul.f32 %v474_v45, %v465_v36  ;;  %v483_v56 = vmul.f32 %v475_v24, %v466_v37  ;;  %v472_v41 = vld [vmem:[#allocation2] sm:$0xf] }
 0x1a2   : > { %v477_v49 = vmul.f32 %v468_v46, %v468_v46  ;;  %v478_v50 = vmul.f32 %v469_v47, %v469_v47  ;;  %v479_v52 = vmul.f32 %v470_v28, %v470_v28  ;;  %v484_v57 = vmul.f32 %v476_v21, %v467_v40 }
 0x1a3   : > { %v480_v53 = vmul.f32 %v471_v48, %v471_v48 }
 0x1a4   : > { %v485_v35 = vmul.f32 %v477_v49, %v468_v46  ;;  %v486_v34 = vmul.f32 %v478_v50, %v469_v47  ;;  %v487_v58 = vmul.f32 %v479_v52, %v470_v28  ;;  %v573_v49 = vsub.s32 3, %v527_v18 }
 0x1a5   : > { %v488_v39 = vmul.f32 %v480_v53, %v471_v48  ;;  %v565_v48 = vsub.s32 1, %v527_v18  ;;  %v561_v52 = vsub.s32 0, %v527_v18 }
 0x1a6   : > { %v489_v59 = vadd.f32 %v485_v35, %v481_v54  ;;  %v496_v60 = vadd.f32 %v486_v34, %v482_v29  ;;  %v503_v61 = vadd.f32 %v487_v58, %v483_v56 }
 0x1a7   : > { %v510_v62 = vadd.f32 %v488_v39, %v484_v57 }
 0x1a8   : > { %v490_v63 = vrot.slane %v489_v59, 4  ;;  %v497_v0 = vrot.slane %v496_v60, 4  ;;  %v504_v1 = vrot.slane %v503_v61, 4 }
 0x1a9   : > { %v511_v2 = vrot.slane %v510_v62, 4 }
 0x1aa   : > { %v491_v3 = vadd.f32 %v490_v63, %v489_v59  ;;  %v498_v6 = vadd.f32 %v497_v0, %v496_v60  ;;  %v505_v7 = vadd.f32 %v504_v1, %v503_v61  ;;  %v647_v63 = vld [vmem:[%s1681_s3] sm:$0x1] }
 0x1ab   : > { %v512_v8 = vadd.f32 %v511_v2, %v510_v62 }
 0x1ac   : > { %v492_v9 = vrot.slane %v491_v3, 2  ;;  %v499_v10 = vrot.slane %v498_v6, 2  ;;  %v506_v11 = vrot.slane %v505_v7, 2 }
 0x1ad   : > { %v513_v12 = vrot.slane %v512_v8, 2 }
 0x1ae   : > { %v493_v13 = vadd.f32 %v492_v9, %v491_v3  ;;  %v500_v15 = vadd.f32 %v499_v10, %v498_v6  ;;  %v507_v16 = vadd.f32 %v506_v11, %v505_v7 }
 0x1af   : > { %v514_v17 = vadd.f32 %v513_v12, %v512_v8 }
 0x1b0   : > { %v494_v19 = vrot.slane %v493_v13, 1  ;;  %v501_v22 = vrot.slane %v500_v15, 1  ;;  %v508_v23 = vrot.slane %v507_v16, 1 }
 0x1b1   : > { %v515_v25 = vrot.slane %v514_v17, 1 }
 0x1b2   : > { %v495_v26 = vadd.f32 %v494_v19, %v493_v13  ;;  %v502_v27 = vadd.f32 %v501_v22, %v500_v15  ;;  %v509_v30 = vadd.f32 %v508_v23, %v507_v16 }
 0x1b3   : > { %v516_v31 = vadd.f32 %v515_v25, %v514_v17 }
 0x1b4   : > { %v521_v33 = vcombine.low %v495_v26, %v502_v27 }
 0x1b5   : > { %v522_v36 = vcombine.low %v509_v30, %v516_v31 }
 0x1b6   : > { %v529_v37 = vrot.slane %v521_v33, %v528_v32 }
 0x1b7   : > { %v536_v38 = vrot.slane %v522_v36, %v528_v32 }
 0x1b9   : > { %v537_v40 = vcombine.low %v529_v37, %v536_v38 }
 0x1bb   : > { %v544_v42 = vrot.slane %v537_v40, %v528_v32 }
 0x1bd   : > { %v546_v43 = vadd.f32 %v544_v42, %v472_v41 }
 0x1bf   : > { %551 = vst.msk [vmem:[#allocation2] sm:$0xf] %vm1528_vm1, %v546_v43 }
 0x1c6   : > { %v555_v51 = vld [vmem:[#allocation2] sm:$0xf] }
 0x1c7   : > { %v556_v44 = vmul.f32 0.0625, %v555_v51 }
 0x1c9   : > { %v1119_v20 = vand.u32 2147483647, %v556_v44  ;;  %v1123_v46 = vand.u32 2147483648, %v556_v44  ;;  %vm1118_vm4 = vcmp.lt.f32.partialorder %v556_v44, 0.0  ;;  %vm1117_vm5 = vcmp.eq.f32.partialorder %v556_v44, 0.0 }
 0x1cb   : > { %1254 = vlog2.f32 %v1119_v20  ;;  %vm1127_vm2 = vweird.f32 %v1119_v20  ;;  %vm1129_vm3 = vcmp.eq.f32.partialorder %v1119_v20, 0.0  ;;  %vm1120_vm6 = vcmp.eq.f32.partialorder %v1119_v20, inf }
 0x1d5   : > { %v1255_v45 = vpop.eup %1254 }
 0x1d6   : > { %v1124_v24 = vmul.f32 0.33333334, %v1255_v45 }
 0x1d8   : > { %1256 = vpow2.f32 %v1124_v24 }
 0x1e2   : > { %v1257_v21 = vpop.eup %1256 }
 0x1e3   : > { %v1126_v47 = vor.u32 %v1257_v21, %v1123_v46 }
 0x1e5   : > { %v1128_v28 = vsel %vm1127_vm2, %v556_v44, %v1126_v47 }
 0x1e6   : > { %v1131_v50 = vsel %vm1129_vm3, %v1123_v46, %v1128_v28 }
 0x1e7   : > { %v1132_v53 = vsel %vm1118_vm4, nan, %v1131_v50 }
 0x1e8   : > { %v1133_v54 = vsel %vm1117_vm5, 0.0, %v1132_v53 }
 0x1e9   : > { %v1134_v29 = vsel %vm1120_vm6, inf, %v1133_v54 }
 0x1ea   : > { %v566_v56 = vrot.slane %v1134_v29, %v565_v48  ;;  %v574_v35 = vrot.slane %v1134_v29, %v573_v49  ;;  %v562_v57 = vrot.slane %v1134_v29, %v561_v52  ;;  %v570_v34 = vrot.slane %v1134_v29, %v569_v55 }
 0x1ec   : > { %v580_v58 = vpack.c.bf16 %v566_v56, %v566_v56  ;;  %v582_v39 = vpack.c.bf16 %v574_v35, %v574_v35  ;;  %v579_v59 = vpack.c.bf16 %v562_v57, %v562_v57  ;;  %v581_v60 = vpack.c.bf16 %v570_v34, %v570_v34 }
 0x1ee   : > { %872 = vmatprep.mubr.bf16.mxu0 %v580_v58  ;;  %912 = vmatprep.mubr.bf16.mxu1 %v582_v39 }
 0x1ef   : > { %873 = vmatmul.mubr.bf16.vlgmr.msra.gmra.mrb[4].mxu0 %v579_v59  ;;  %913 = vmatmul.mubr.bf16.vlgmr.msra.gmra.mrb[4].mxu1 %v581_v60 }
 0x2c2   : > { %v1089_v61 = vpop.f32.mrb[4].mxu0  ;;  %v1111_v62 = vpop.f32.mrb[4].mxu1 }
 0x2c3   : > { %v1090_v0 = vpop.f32.mrb[5].mxu0  ;;  %v1112_v1 = vpop.f32.mrb[5].mxu1 }
 0x2c4   : > { %v1091_v2 = vadd.f32 %v1090_v0, %v1089_v61  ;;  %v1113_v3 = vadd.f32 %v1112_v1, %v1111_v62  ;;  %v1092_v4 = vpop.f32.mrb[6].mxu0  ;;  %v1114_v5 = vpop.f32.mrb[6].mxu1 }
 0x2c5   : > { %v1093_v6 = vpop.f32.mrb[7].mxu0  ;;  %v1115_v7 = vpop.f32.mrb[7].mxu1 }
 0x2c6   : > { %v875_v8 = vadd.f32 %v1091_v2, %v647_v63 }
 0x2c8   : > { %v915_v9 = vadd.f32 %v1113_v3, %v875_v8 }
 0x2ca   : > { %v920_v10 = vmul.f32 %v915_v9, %v915_v9 }
 0x2cc   : > { %v922_v11 = vsel %vm921_vm7, %v920_v10, 0.0 }
 0x2cd   : > { %923 = vadd.xlane.f32.xlu1 %v922_v11 }
 0x35a   : > { %v924_v12 = vpop.xlane.xlu1 %923 }
 0x35b   : > { %v925_v13 = vmax.f32 %v924_v12, 1e-24 }
 0x35d   : > { %1258 = vrsqrt.f32 %v925_v13 }
 0x367   : > { %v1259_v14 = vpop.eup %1258 }
 0x368   : > { %v927_v15 = vmul.f32 %v1259_v14, %v915_v9 }
 0x36a   : > { %928 = vst [vmem:[%s212_s13] sm:$0x1] %v927_v15 }
 0x36b   : > { %1273 = shalt.err (!%p1270_p5)
}
 0x36c   : > { %s1274_s5 = scalar_lea.hbm %s1631_s22, 16  ;;  %s1278_s6 = scalar_lea.hbm %s1682_s4, 32 }
 0x36d   : > { %p1275_p6 = scmp.ne.s32.totalorder %s1631_s22, %s1274_s5  ;;  %p1279_p10 = scmp.lt.u32.totalorder %s1631_s22, %s1682_s4 }
 0x36e   : > { %p1280_p11 = scmp.lt.u32.totalorder %s1278_s6, %s1274_s5  ;;  %p1282_p13 = scmp.lt.u32.totalorder %s1274_s5, %s1631_s22 }
 0x36f   : > { %p1276_p7 = pnand %p1275_p6, %p1409_p4 }
 0x370   : > { %p1281_p12 = por %p1280_p11, %p1279_p10 }
 0x371   : > { %p1277_p9 = pneg %p1276_p7 }
 0x372   : > { %p1283_p0 = por %p1282_p13, %p1281_p12 }
 0x374   : > { %p1284_p1 = pnand %p1283_p0, %p1277_p9 }
 0x376   : > { %1287 = shalt.err (!%p1284_p1)
}
 0x377   : > { %1135 = dma.vmem_to_hbm [thread:$0]  (%p1409_p4), %s1633_s14, 16, %s1631_s22, %s930_s24  }
 0x378 PF: > { %p1141_p2 = scmp.ge.s32.totalorder %s1338_s20, 2  ;;  %s954_s12 = sand.u32 1, %s1318_s15  }
 0x379   : > { %s955_s13 = scalar_lea.sflag [#allocation4], %s954_s12 }
 0x37a   : > { %p1138_p3 = pnand %p1141_p2, %p1416_p8 }
 0x37c   : > { %1313 = dma.done.wait (!%p1138_p3), %s955_s13, 16  }
 0x37d   : > { %1315 = vsyncadd (!%p1138_p3), %s955_s13, 4294967280  ;;  %s17_s20 = sadd.s32 1, %s1338_s20   ;;  %s1687_s15 = smov %s1322_s16 }
 0x37e   : > { %p14_p5 = scmp.ge.s32.totalorder %s17_s20, 4   ;;  %s1688_s16 = smov %s1326_s17 }
 0x37f   : > { %s1689_s17 = smov %s1422_s28  ;;  %s1690_s18 = smov %s1334_s19 }
 0x380   : > { %s1691_s19 = smov %s1693_s23  ;;  %16 = sbr.rel (!%p14_p5) target bundleno = 4 (0x4), region = 79 }
 0x387   :  { %959 = vsyncpa [#allocation4], 1 }
 0x388   :  { %961 = vsyncpa [#allocation4 + $0x1], 1 }

</bundles_post_ra>
